<compile_context>
chip_gen: v6e
topology: v6e:2x2x1
jax: 0.10.0
libtpu: 0.0.40
codegen_flags: <defaults>
</compile_context>

<pallas_src>
import functools

import jax
import jax.numpy as jnp
from jax.experimental import pallas as pl
from jax.experimental.pallas import tpu as pltpu


_LANE = 128
# Per-array, per-buffer block budget (~4 MiB).  Double-buffered input + output
# blocks => ~16 MiB scoped VMEM, comfortably inside the 32 MiB limit requested
# below on every generation (v5e's default scoped VMEM is only 16 MiB, so the
# explicit vmem_limit_bytes matters there).
_BLOCK_BYTES = 4 * 1024 * 1024
_VMEM_LIMIT = 32 * 1024 * 1024


def _copy_kernel(x_ref, o_ref):
    # Pure lane-aligned copy: the chomp is expressed entirely by the grid /
    # BlockSpec bounds, so the body never shifts data across lanes.
    o_ref[...] = x_ref[...]


def _slice_kernel(x_ref, o_ref, *, start: int, out_len: int):
    # Static slice of the full row.  An unaligned `start` lowers to XLU
    # rotates, which hide under the DMA in this memory-bound kernel.
    o_ref[...] = x_ref[:, start:start + out_len]


def _round_up(a: int, b: int) -> int:
    return ((a + b - 1) // b) * b


def _round_down(a: int, b: int) -> int:
    return (a // b) * b


def chomp1d(x: jnp.ndarray, chomp_size: int, last: bool = True) -> jnp.ndarray:
    """Pallas implementation of Chomp1d.forward.

    x: (B, C, L) array.  Returns (B, C, L - chomp_size).
    """
    B, C, L = x.shape
    assert 0 < chomp_size < L, "chomp_size must satisfy 0 < chomp_size < L"
    out_len = L - chomp_size
    R = B * C

    x2 = x.reshape(R, L)  # free, layout-preserving reshape

    dtype_bytes = jnp.dtype(x.dtype).itemsize
    # Sublane granularity: 8 rows for 32-bit, 16 for 16-bit, 32 for 8-bit.
    sub = max(8, 32 // dtype_bytes)

    if last and out_len >= _LANE:
        # --- Trailing chomp, wide enough to column-tile (chomp-in-DMA path). ---
        cols_full = _round_down(out_len, _LANE)          # >= 128 here
        cols_budget = max(
            _LANE, _round_down(_BLOCK_BYTES // (sub * dtype_bytes), _LANE))
        cols = min(cols_full, cols_budget)

        if R <= sub:
            rows = R                                     # full-dim block, legal
        else:
            rows_budget = max(
                sub, _round_down(_BLOCK_BYTES // (cols * dtype_bytes), sub))
            rows = min(_round_up(R, sub), rows_budget)

        grid = (pl.cdiv(R, rows), pl.cdiv(out_len, cols))
        in_spec = pl.BlockSpec((rows, cols), lambda r, c: (r, c))
        out_spec = pl.BlockSpec((rows, cols), lambda r, c: (r, c))
        kernel = _copy_kernel
        dim_sem = ("parallel", "parallel")
    else:
        # --- Leading chomp (unaligned start) or very short kept prefix. ---
        # Slice inside the kernel instead of in the wrapper: avoids a full
        # extra XLA read+write pass over the tensor for last=False.
        start = 0 if last else chomp_size
        if R <= sub:
            rows = R
        else:
            rows_budget = max(
                sub,
                _round_down(
                    (_VMEM_LIMIT // 4) // max(1, (L + out_len) * dtype_bytes), sub),
            )
            rows = min(_round_up(R, sub), rows_budget)
        # TODO(synk): column-tile this path (paired input column blocks + an
        # in-kernel shift) if even `sub` rows of length L exceed the budget for
        # extremely long sequences.

        grid = (pl.cdiv(R, rows),)
        in_spec = pl.BlockSpec((rows, L), lambda r: (r, 0))
        out_spec = pl.BlockSpec((rows, out_len), lambda r: (r, 0))
        kernel = functools.partial(_slice_kernel, start=start, out_len=out_len)
        dim_sem = ("parallel",)

    out2 = pl.pallas_call(
        kernel,
        out_shape=jax.ShapeDtypeStruct((R, out_len), x.dtype),
        grid_spec=pl.GridSpec(grid=grid, in_specs=[in_spec], out_specs=out_spec),
        compiler_params=pltpu.CompilerParams(
            dimension_semantics=dim_sem,
            vmem_limit_bytes=_VMEM_LIMIT,
        ),
    )(x2)

    return out2.reshape(B, C, out_len)


if __name__ == "__main__":
    key = jax.random.PRNGKey(0)

    def ref(x, s, last):
        return x[:, :, :-s] if last else x[:, :, s:]

    # (shape, chomp_size) cases:
    #   small & unaligned  -> in-kernel slice path
    #   lane-aligned       -> column-tiled chomp-in-DMA copy path
    #   wide, ragged tail  -> masked final column block + OOB-padded input read
    cases = [
        ((2, 4, 16), 3),
        ((2, 8, 384), 128),
        ((2, 8, 250), 5),
    ]
    keys = jax.random.split(key, len(cases))
    for (shape, s), k in zip(cases, keys):
        x = jax.random.normal(k, shape, dtype=jnp.float32)
        for last in (True, False):
            out = chomp1d(x, s, last=last)
            jax.block_until_ready(out)
            expect = ref(x, s, last)
            assert out.shape == expect.shape, (shape, s, last, out.shape)
            assert jnp.allclose(out, expect), f"mismatch shape={shape} s={s} last={last}"

    print("KERNEL_OK")
</pallas_src>

<mosaic_0001>
module attributes {stable_mosaic.version = 11 : i64} {
  func.func @_slice_kernel(%arg0: i32, %arg1: memref<8x16xf32, #tpu.memory_space<vmem>>, %arg2: memref<8x13xf32, #tpu.memory_space<vmem>>) attributes {dimension_semantics = [#tpu.dimension_semantics<parallel>], iteration_bounds = array<i64: 1>, scalar_prefetch = 0 : i64, scratch_operands = 0 : i64, tpu.core_type = #tpu.core_type<tc>, window_params = [{transform_indices = @transform_0, window_bounds = array<i64: 8, 16>}, {transform_indices = @transform_1, window_bounds = array<i64: 8, 13>}]} {
    %c0 = arith.constant 0 : index
    %c0_0 = arith.constant 0 : index
    %0 = vector.load %arg1[%c0, %c0_0] : memref<8x16xf32, #tpu.memory_space<vmem>>, vector<8x13xf32>
    %c0_1 = arith.constant 0 : index
    %c0_2 = arith.constant 0 : index
    %1 = vector.load %arg2[%c0_1, %c0_2] : memref<8x13xf32, #tpu.memory_space<vmem>>, vector<8x13xf32>
    tpu.vector_store %arg2[%c0_1, %c0_2], %0 {strides = array<i32>} : memref<8x13xf32, #tpu.memory_space<vmem>>, vector<8x13xf32>,
    return
  }
  func.func @transform_0(%arg0: i32) -> (i32, i32) {
    %c0_i32 = arith.constant 0 : i32
    %c0_i32_0 = arith.constant 0 : i32
    return %arg0, %c0_i32 : i32, i32
  }
  func.func @transform_1(%arg0: i32) -> (i32, i32) {
    %c0_i32 = arith.constant 0 : i32
    %c0_i32_0 = arith.constant 0 : i32
    return %arg0, %c0_i32 : i32, i32
  }
}

</mosaic_0001>

<bundles_post_ra>
// kernel: tpu_custom_call.1
= control target key start
LH: loop header
LB: loop body
LE: loop exit
PB: predicated region body
PF: predicated region fallthrough
CT: control target
= control target key end

     0   :  { %6 = vsyncpa [#allocation3], 0  ;;  %s103_s0 = inlined_call_operand.hbm [shape: f32[8,16], index: 0, kind: input, shape index: {}]   ;;  %s104_s1 = inlined_call_operand.hbm [shape: f32[8,13], index: 1, kind: output, shape index: {}]  }
   0x1   :  { %7 = vsyncpa [#allocation4], 0  ;;  %s85_s6 = smov [#allocation2]  }
   0x2   :  { %s14_s7 = sshll.u32 %s85_s6, 4  ;;  %s15_s7 = int_to_ptr.vmem [resolvable:$true] %s14_s7 }
   0x3   :  { %s49_s8 = scalar_lea.vmem %s15_s7, 128  ;;  %p54_p1 = scmp.lt.s32.totalorder %s15_s7, %s15_s7 }
   0x4   :  { %p50_p0 = scmp.ne.s32.totalorder %s15_s7, %s49_s8  ;;  %p55_p2 = scmp.lt.s32.totalorder %s49_s8, %s49_s8 }
   0x6   :  { %p56_p3 = por %p55_p2, %p54_p1 }
   0x8   :  { %p57_p4 = pnand %p56_p3, %p50_p0 }
   0xa   :  { %60 = shalt.err (!%p57_p4)
}
   0xb   :  { %17 = dma.hbm_to_vmem [thread:$0]  %s103_s0, 128, %s15_s7, [#allocation3]  }
   0xc   :  { %81 = dma.done.wait [#allocation3], 128  }
   0xd   :  { %82 = vsyncadd [#allocation3], 4294967168  ;;  %s86_s11 = smov [#allocation5]   ;;  %vm22_vm0 = vcmask 105472   ;;  %v21_v0 = vld [vmem:[#allocation2] sm:$0xff] }
   0xe   :  { %s30_s12 = sshll.u32 %s86_s11, 4  ;;  %23 = vst.msk [vmem:[#allocation5] sm:$0xff] %vm22_vm0, %v21_v0  ;;  %s31_s12 = int_to_ptr.vmem [resolvable:$true] %s30_s12 }
   0xf   :  { %s61_s13 = scalar_lea.vmem %s31_s12, 128  ;;  %p66_p6 = scmp.lt.s32.totalorder %s31_s12, %s31_s12 }
  0x10   :  { %p62_p5 = scmp.ne.s32.totalorder %s31_s12, %s61_s13  ;;  %p67_p7 = scmp.lt.s32.totalorder %s61_s13, %s61_s13 }
  0x12   :  { %p68_p8 = por %p67_p7, %p66_p6 }
  0x14   :  { %p69_p9 = pnand %p68_p8, %p62_p5 }
  0x16   :  { %72 = shalt.err (!%p69_p9)
}
  0x17   :  { %33 = dma.vmem_to_hbm [thread:$0]  %s31_s12, 128, %s104_s1, [#allocation4]  }
  0x18   :  { %83 = dma.done.wait [#allocation4], 128  }
  0x19   :  { %84 = vsyncadd [#allocation4], 4294967168 }
  0x1a   :  { %37 = vsyncpa [#allocation3], 1 }
  0x1b   :  { %38 = vsyncpa [#allocation4], 1 }

</bundles_post_ra>
